<compile_context>
chip_gen: v6e
topology: v6e:2x2x1
jax: 0.10.0
libtpu: 0.0.40
codegen_flags: <defaults>
</compile_context>

<pallas_src>
import jax
import jax.numpy as jnp
from jax.experimental import pallas as pl
from jax.experimental.pallas import tpu as pltpu

LPAD = 128   # lane-aligned left offset of sp inside the zero-padded scratch.


def _make_kernel(C, T, K, DIL, PAD, SCALE):
    W = C // SCALE
    NUMS = SCALE if SCALE == 1 else SCALE - 1

    def kernel(x_ref,
               w1_ref, s1_ref, b1_ref,              # Conv1dReluBn #1 (1x1 conv + folded BN)
               rw_ref, rs_ref, rb_ref,              # Res2Conv1dReluBn (per-split, per-tap weights)
               w3_ref, s3_ref, b3_ref,              # Conv1dReluBn #2 (1x1 conv + folded BN)
               sw1_ref, sb1_ref, sw2_ref, sb2_ref,  # SE_Connect
               o_ref,
               pad_ref, y1_ref, y2_ref):            # VMEM scratch
        # Zero the pad stripes of the padded-sp scratch.  Done unconditionally
        # every grid step (cheap; never overwritten by the sp store) so it is
        # safe under megacore partitioning of the batch axis.
        pad_ref[:, :LPAD] = jnp.zeros((W, LPAD), jnp.bfloat16)
        pad_ref[:, LPAD + T:] = jnp.zeros((W, LPAD), jnp.bfloat16)

        # ---- Conv1dReluBn #1: 1x1 conv -> ReLU -> BN (folded affine) ----
        y = jnp.dot(w1_ref[...], x_ref[...].astype(jnp.bfloat16),
                    preferred_element_type=jnp.float32)
        y = jnp.maximum(y, 0.0) * s1_ref[...] + b1_ref[...]         # (C, T) f32
        # Spill to scratch immediately so the (C, T) f32 value does not stay
        # live (and get compiler-spilled) across the unrolled Res2 loop.
        y1_ref[...] = y[:NUMS * W, :]                                # Res2 split inputs, f32
        if SCALE != 1:
            y2_ref[NUMS * W:, :] = y[NUMS * W:, :].astype(jnp.bfloat16)  # pass-through split

        # ---- Res2Conv1dReluBn: NUMS dilated convs with running accumulation ----
        sp = None
        for i in range(NUMS):
            grp = y1_ref[i * W:(i + 1) * W, :]                       # (W, T) f32
            sp = grp if i == 0 else sp + grp
            # One lane-aligned store of sp into the zero-padded scratch; the K
            # dilated shifts are read directly as MXU operands (no im2col).
            pad_ref[:, LPAD:LPAD + T] = sp.astype(jnp.bfloat16)
            acc = None
            for j in range(K):
                off = LPAD - PAD + j * DIL
                d = jnp.dot(rw_ref[i, j], pad_ref[:, off:off + T],   # (W,W) x (W,T)
                            preferred_element_type=jnp.float32)
                acc = d if acc is None else acc + d
            sp = jnp.maximum(acc, 0.0) * rs_ref[i] + rb_ref[i]       # (W, T) f32
            y2_ref[i * W:(i + 1) * W, :] = sp.astype(jnp.bfloat16)

        # ---- Conv1dReluBn #2 ----
        y3 = jnp.dot(w3_ref[...], y2_ref[...],
                     preferred_element_type=jnp.float32)
        y3 = jnp.maximum(y3, 0.0) * s3_ref[...] + b3_ref[...]        # (C, T) f32

        # ---- SE_Connect (tiny N=1 matvecs; deliberately not a perf target) ----
        m = jnp.sum(y3, axis=1, keepdims=True) * (1.0 / T)           # (C, 1)
        h = jnp.dot(sw1_ref[...], m.astype(jnp.bfloat16),
                    preferred_element_type=jnp.float32) + sb1_ref[...]
        h = jnp.maximum(h, 0.0)
        g = jnp.dot(sw2_ref[...], h.astype(jnp.bfloat16),
                    preferred_element_type=jnp.float32) + sb2_ref[...]
        g = jax.nn.sigmoid(g)                                        # (C, 1)

        # ---- residual (re-read x from the VMEM ref; cast at the store) ----
        o_ref[...] = (x_ref[...].astype(jnp.float32) + y3 * g).astype(o_ref.dtype)

    return kernel


def _weight_spec(a):
    nd = a.ndim
    idx = lambda b, _nd=nd: (0,) * _nd
    try:
        # Constant index map: fetched once, so single-buffer to save VMEM.
        return pl.BlockSpec(a.shape, idx, pipeline_mode=pl.Buffered(1))
    except (TypeError, AttributeError):   # older BlockSpec without pipeline_mode
        return pl.BlockSpec(a.shape, idx)


def se_res2block(x, params, *, kernel_size, stride, dilation, padding, scale,
                 out_dtype=jnp.bfloat16):
    assert stride == 1, "residual add requires stride=1 (time dim preserved)"
    assert padding == dilation * (kernel_size - 1) // 2, \
        "padding must give 'same' output length (PyTorch semantics preserved)"
    assert padding <= LPAD
    B, C, T = x.shape
    assert C % scale == 0
    W = C // scale
    NUMS = scale if scale == 1 else scale - 1
    K = kernel_size
    assert C % 8 == 0 and W % 8 == 0, "channel splits must be sublane (8) aligned"
    assert params[9].shape[0] % 8 == 0, "SE bottleneck dim must be a multiple of 8"

    kern = _make_kernel(C, T, K, dilation, padding, scale)

    # Full (C, T) blocks: full array dims are exempt from (8,128) divisibility,
    # so no host-side pad / slice HBM round trips are needed.
    in_specs = [pl.BlockSpec((None, C, T), lambda b: (b, 0, 0))]
    in_specs += [_weight_spec(p) for p in params]

    # Per-step VMEM footprint: double-buffered x/out blocks + single-buffered
    # weights + scratch.  Cap well below v7x's 64 MiB physical VMEM.
    out_isize = jax.dtypes.canonicalize_dtype(out_dtype).itemsize
    est = (2 * C * T * x.dtype.itemsize + 2 * C * T * out_isize
           + sum(int(p.size) * p.dtype.itemsize for p in params)
           + W * (T + 2 * LPAD) * 2 + NUMS * W * T * 4 + C * T * 2)
    vmem_limit = int(min(48 * 1024 * 1024, max(2 * est, 16 * 1024 * 1024)))

    return pl.pallas_call(
        kern,
        out_shape=jax.ShapeDtypeStruct((B, C, T), out_dtype),
        grid=(B,),
        in_specs=in_specs,
        out_specs=pl.BlockSpec((None, C, T), lambda b: (b, 0, 0)),
        scratch_shapes=[
            pltpu.VMEM((W, T + 2 * LPAD), jnp.bfloat16),   # zero-padded split input
            pltpu.VMEM((NUMS * W, T), jnp.float32),        # conv #1 output splits (f32)
            pltpu.VMEM((C, T), jnp.bfloat16),              # Res2 output (feeds conv #2)
        ],
        compiler_params=pltpu.CompilerParams(
            dimension_semantics=("parallel",),
            vmem_limit_bytes=vmem_limit,
        ),
    )(x, *params)


def init_params(key, C, K, scale, s=2, eps=1e-5):
    """Deterministic synthetic parameters; BN folded into (scale, bias)."""
    W = C // scale
    NUMS = scale if scale == 1 else scale - 1
    keys = iter(jax.random.split(key, 32))

    def nrm(shape, sc=0.2):
        return (sc * jax.random.normal(next(keys), shape)).astype(jnp.float32)

    def bn_fold(shape):
        gamma = 1.0 + 0.1 * jax.random.normal(next(keys), shape)
        beta = 0.1 * jax.random.normal(next(keys), shape)
        rmean = 0.1 * jax.random.normal(next(keys), shape)
        rvar = 1.0 + 0.1 * jax.random.uniform(next(keys), shape)
        sc = gamma / jnp.sqrt(rvar + eps)
        bi = beta - rmean * sc
        return sc.astype(jnp.float32), bi.astype(jnp.float32)

    # Conv1dReluBn #1 (1x1 conv, MXU operand -> bf16)
    w1 = nrm((C, C)).astype(jnp.bfloat16)
    s1, b1 = bn_fold((C, 1))
    # Res2Conv1dReluBn: per-split conv weight (W_out, W_in, K) laid out per tap
    # as rw[i, j, o, in] = w[i][o, in, j] -> K direct (W, W) MXU operands.
    rw4 = nrm((NUMS, W, W, K))
    rw = jnp.transpose(rw4, (0, 3, 1, 2)).astype(jnp.bfloat16)      # (NUMS, K, W, W)
    rs, rb = bn_fold((NUMS, W, 1))
    # Conv1dReluBn #2 (1x1 conv)
    w3 = nrm((C, C)).astype(jnp.bfloat16)
    s3, b3 = bn_fold((C, 1))
    # SE_Connect: linear1 (C//s, C) + bias, linear2 (C, C//s) + bias
    sw1 = nrm((C // s, C)).astype(jnp.bfloat16)
    sb1 = nrm((C // s, 1), 0.1)
    sw2 = nrm((C, C // s)).astype(jnp.bfloat16)
    sb2 = nrm((C, 1), 0.1)
    return (w1, s1, b1, rw, rs, rb, w3, s3, b3, sw1, sb1, sw2, sb2)


if __name__ == "__main__":
    # Small shapes consistent with the module: channels divisible by scale and s=2.
    B, C, T = 2, 32, 16
    kernel_size, stride, padding, dilation, scale = 3, 1, 1, 1, 4

    key = jax.random.PRNGKey(0)
    kx, kp = jax.random.split(key)
    x = jax.random.normal(kx, (B, C, T), dtype=jnp.float32)
    params = init_params(kp, C, kernel_size, scale)

    out = se_res2block(x, params, kernel_size=kernel_size, stride=stride,
                       dilation=dilation, padding=padding, scale=scale)
    jax.block_until_ready(out)
    assert out.shape == (B, C, T) and out.dtype == jnp.bfloat16
    print("KERNEL_OK")
</pallas_src>

<mosaic_0001>
module attributes {stable_mosaic.version = 11 : i64} {
  func.func @kernel(%arg0: i32, %arg1: memref<1x32x16xf32, #tpu.memory_space<vmem>>, %arg2: memref<32x32xbf16, #tpu.memory_space<vmem>>, %arg3: memref<32x1xf32, #tpu.memory_space<vmem>>, %arg4: memref<32x1xf32, #tpu.memory_space<vmem>>, %arg5: memref<3x3x8x8xbf16, #tpu.memory_space<vmem>>, %arg6: memref<3x8x1xf32, #tpu.memory_space<vmem>>, %arg7: memref<3x8x1xf32, #tpu.memory_space<vmem>>, %arg8: memref<32x32xbf16, #tpu.memory_space<vmem>>, %arg9: memref<32x1xf32, #tpu.memory_space<vmem>>, %arg10: memref<32x1xf32, #tpu.memory_space<vmem>>, %arg11: memref<16x32xbf16, #tpu.memory_space<vmem>>, %arg12: memref<16x1xf32, #tpu.memory_space<vmem>>, %arg13: memref<32x16xbf16, #tpu.memory_space<vmem>>, %arg14: memref<32x1xf32, #tpu.memory_space<vmem>>, %arg15: memref<1x32x16xbf16, #tpu.memory_space<vmem>>, %arg16: memref<8x272xbf16, #tpu.memory_space<vmem>>, %arg17: memref<24x16xf32, #tpu.memory_space<vmem>>, %arg18: memref<32x16xbf16, #tpu.memory_space<vmem>>) attributes {dimension_semantics = [#tpu.dimension_semantics<parallel>], iteration_bounds = array<i64: 2>, scalar_prefetch = 0 : i64, scratch_operands = 3 : i64, tpu.core_type = #tpu.core_type<tc>, window_params = [{transform_indices = @transform_0, window_bounds = array<i64: 1, 32, 16>}, {pipeline_mode = #tpu.pipeline_mode<synchronous>, transform_indices = @transform_1, window_bounds = array<i64: 32, 32>}, {pipeline_mode = #tpu.pipeline_mode<synchronous>, transform_indices = @transform_2, window_bounds = array<i64: 32, 1>}, {pipeline_mode = #tpu.pipeline_mode<synchronous>, transform_indices = @transform_3, window_bounds = array<i64: 32, 1>}, {pipeline_mode = #tpu.pipeline_mode<synchronous>, transform_indices = @transform_4, window_bounds = array<i64: 3, 3, 8, 8>}, {pipeline_mode = #tpu.pipeline_mode<synchronous>, transform_indices = @transform_5, window_bounds = array<i64: 3, 8, 1>}, {pipeline_mode = #tpu.pipeline_mode<synchronous>, transform_indices = @transform_6, window_bounds = array<i64: 3, 8, 1>}, {pipeline_mode = #tpu.pipeline_mode<synchronous>, transform_indices = @transform_7, window_bounds = array<i64: 32, 32>}, {pipeline_mode = #tpu.pipeline_mode<synchronous>, transform_indices = @transform_8, window_bounds = array<i64: 32, 1>}, {pipeline_mode = #tpu.pipeline_mode<synchronous>, transform_indices = @transform_9, window_bounds = array<i64: 32, 1>}, {pipeline_mode = #tpu.pipeline_mode<synchronous>, transform_indices = @transform_10, window_bounds = array<i64: 16, 32>}, {pipeline_mode = #tpu.pipeline_mode<synchronous>, transform_indices = @transform_11, window_bounds = array<i64: 16, 1>}, {pipeline_mode = #tpu.pipeline_mode<synchronous>, transform_indices = @transform_12, window_bounds = array<i64: 32, 16>}, {pipeline_mode = #tpu.pipeline_mode<synchronous>, transform_indices = @transform_13, window_bounds = array<i64: 32, 1>}, {transform_indices = @transform_14, window_bounds = array<i64: 1, 32, 16>}]} {
    %cst = arith.constant 0.000000e+00 : bf16
    %0 = vector.broadcast %cst : bf16 to vector<8x128xbf16>
    %c0 = arith.constant 0 : index
    %c0_0 = arith.constant 0 : index
    %1 = vector.load %arg16[%c0, %c0_0] : memref<8x272xbf16, #tpu.memory_space<vmem>>, vector<8x128xbf16>
    tpu.vector_store %arg16[%c0, %c0_0], %0 {strides = array<i32>} : memref<8x272xbf16, #tpu.memory_space<vmem>>, vector<8x128xbf16>,
    %cst_1 = arith.constant 0.000000e+00 : bf16
    %2 = vector.broadcast %cst_1 : bf16 to vector<8x128xbf16>
    %c0_2 = arith.constant 0 : index
    %c144 = arith.constant 144 : index
    %3 = vector.load %arg16[%c0_2, %c144] : memref<8x272xbf16, #tpu.memory_space<vmem>>, vector<8x128xbf16>
    tpu.vector_store %arg16[%c0_2, %c144], %2 {strides = array<i32>} : memref<8x272xbf16, #tpu.memory_space<vmem>>, vector<8x128xbf16>,
    %c0_3 = arith.constant 0 : index
    %c0_4 = arith.constant 0 : index
    %4 = vector.load %arg2[%c0_3, %c0_4] : memref<32x32xbf16, #tpu.memory_space<vmem>>, vector<32x32xbf16>
    %c0_5 = arith.constant 0 : index
    %c0_6 = arith.constant 0 : index
    %c0_7 = arith.constant 0 : index
    %5 = vector.load %arg1[%c0_5, %c0_6, %c0_7] : memref<1x32x16xf32, #tpu.memory_space<vmem>>, vector<1x32x16xf32>
    %6 = vector.shape_cast %5 : vector<1x32x16xf32> to vector<32x16xf32>
    %7 = arith.truncf %6 : vector<32x16xf32> to vector<32x16xbf16>
    %cst_8 = arith.constant dense<0.000000e+00> : vector<32x16xf32>
    %8 = tpu.matmul %4, %7, %cst_8 {dimension_numbers = #tpu.dot_dimension_numbers<[1], [0], [0], [1], [0, 0, 1, 1], [], []>} : vector<32x32xbf16>, vector<32x16xbf16>, vector<32x16xf32> -> vector<32x16xf32>
    %cst_9 = arith.constant 0.000000e+00 : f32
    %9 = vector.broadcast %cst_9 : f32 to vector<32x16xf32>
    %10 = arith.maximumf %8, %9 : vector<32x16xf32>
    %c0_10 = arith.constant 0 : index
    %c0_11 = arith.constant 0 : index
    %11 = vector.load %arg3[%c0_10, %c0_11] : memref<32x1xf32, #tpu.memory_space<vmem>>, vector<32x1xf32>
    %12 = vector.broadcast %11 : vector<32x1xf32> to vector<32x16xf32>
    %13 = arith.mulf %10, %12 : vector<32x16xf32>
    %c0_12 = arith.constant 0 : index
    %c0_13 = arith.constant 0 : index
    %14 = vector.load %arg4[%c0_12, %c0_13] : memref<32x1xf32, #tpu.memory_space<vmem>>, vector<32x1xf32>
    %15 = vector.broadcast %14 : vector<32x1xf32> to vector<32x16xf32>
    %16 = arith.addf %13, %15 : vector<32x16xf32>
    %17 = vector.extract_strided_slice %16 {offsets = [0, 0], sizes = [24, 16], strides = [1, 1]} : vector<32x16xf32> to vector<24x16xf32>
    %c0_14 = arith.constant 0 : index
    %c0_15 = arith.constant 0 : index
    %18 = vector.load %arg17[%c0_14, %c0_15] : memref<24x16xf32, #tpu.memory_space<vmem>>, vector<24x16xf32>
    tpu.vector_store %arg17[%c0_14, %c0_15], %17 {strides = array<i32>} : memref<24x16xf32, #tpu.memory_space<vmem>>, vector<24x16xf32>,
    %19 = vector.extract_strided_slice %16 {offsets = [24, 0], sizes = [8, 16], strides = [1, 1]} : vector<32x16xf32> to vector<8x16xf32>
    %20 = arith.truncf %19 : vector<8x16xf32> to vector<8x16xbf16>
    %c24 = arith.constant 24 : index
    %c0_16 = arith.constant 0 : index
    %21 = vector.load %arg18[%c24, %c0_16] : memref<32x16xbf16, #tpu.memory_space<vmem>>, vector<8x16xbf16>
    tpu.vector_store %arg18[%c24, %c0_16], %20 {strides = array<i32>} : memref<32x16xbf16, #tpu.memory_space<vmem>>, vector<8x16xbf16>,
    %c0_17 = arith.constant 0 : index
    %c0_18 = arith.constant 0 : index
    %22 = vector.load %arg17[%c0_17, %c0_18] : memref<24x16xf32, #tpu.memory_space<vmem>>, vector<8x16xf32>
    %23 = arith.truncf %22 : vector<8x16xf32> to vector<8x16xbf16>
    %c0_19 = arith.constant 0 : index
    %c128 = arith.constant 128 : index
    %24 = vector.load %arg16[%c0_19, %c128] : memref<8x272xbf16, #tpu.memory_space<vmem>>, vector<8x16xbf16>
    tpu.vector_store %arg16[%c0_19, %c128], %23 {strides = array<i32>} : memref<8x272xbf16, #tpu.memory_space<vmem>>, vector<8x16xbf16>,
    %c0_20 = arith.constant 0 : index
    %c0_21 = arith.constant 0 : index
    %c0_22 = arith.constant 0 : index
    %c0_23 = arith.constant 0 : index
    %25 = vector.load %arg5[%c0_20, %c0_21, %c0_22, %c0_23] : memref<3x3x8x8xbf16, #tpu.memory_space<vmem>>, vector<1x1x8x8xbf16>
    %26 = vector.shape_cast %25 : vector<1x1x8x8xbf16> to vector<8x8xbf16>
    %c0_24 = arith.constant 0 : index
    %c127 = arith.constant 127 : index
    %27 = vector.load %arg16[%c0_24, %c127] : memref<8x272xbf16, #tpu.memory_space<vmem>>, vector<8x16xbf16>
    %cst_25 = arith.constant dense<0.000000e+00> : vector<8x16xf32>
    %28 = tpu.matmul %26, %27, %cst_25 {dimension_numbers = #tpu.dot_dimension_numbers<[1], [0], [0], [1], [0, 0, 1, 1], [], []>} : vector<8x8xbf16>, vector<8x16xbf16>, vector<8x16xf32> -> vector<8x16xf32>
    %c0_26 = arith.constant 0 : index
    %c1 = arith.constant 1 : index
    %c0_27 = arith.constant 0 : index
    %c0_28 = arith.constant 0 : index
    %29 = vector.load %arg5[%c0_26, %c1, %c0_27, %c0_28] : memref<3x3x8x8xbf16, #tpu.memory_space<vmem>>, vector<1x1x8x8xbf16>
    %30 = vector.shape_cast %29 : vector<1x1x8x8xbf16> to vector<8x8xbf16>
    %c0_29 = arith.constant 0 : index
    %c128_30 = arith.constant 128 : index
    %31 = vector.load %arg16[%c0_29, %c128_30] : memref<8x272xbf16, #tpu.memory_space<vmem>>, vector<8x16xbf16>
    %cst_31 = arith.constant dense<0.000000e+00> : vector<8x16xf32>
    %32 = tpu.matmul %30, %31, %cst_31 {dimension_numbers = #tpu.dot_dimension_numbers<[1], [0], [0], [1], [0, 0, 1, 1], [], []>} : vector<8x8xbf16>, vector<8x16xbf16>, vector<8x16xf32> -> vector<8x16xf32>
    %33 = arith.addf %28, %32 : vector<8x16xf32>
    %c0_32 = arith.constant 0 : index
    %c2 = arith.constant 2 : index
    %c0_33 = arith.constant 0 : index
    %c0_34 = arith.constant 0 : index
    %34 = vector.load %arg5[%c0_32, %c2, %c0_33, %c0_34] : memref<3x3x8x8xbf16, #tpu.memory_space<vmem>>, vector<1x1x8x8xbf16>
    %35 = vector.shape_cast %34 : vector<1x1x8x8xbf16> to vector<8x8xbf16>
    %c0_35 = arith.constant 0 : index
    %c129 = arith.constant 129 : index
    %36 = vector.load %arg16[%c0_35, %c129] : memref<8x272xbf16, #tpu.memory_space<vmem>>, vector<8x16xbf16>
    %cst_36 = arith.constant dense<0.000000e+00> : vector<8x16xf32>
    %37 = tpu.matmul %35, %36, %cst_36 {dimension_numbers = #tpu.dot_dimension_numbers<[1], [0], [0], [1], [0, 0, 1, 1], [], []>} : vector<8x8xbf16>, vector<8x16xbf16>, vector<8x16xf32> -> vector<8x16xf32>
    %38 = arith.addf %33, %37 : vector<8x16xf32>
    %cst_37 = arith.constant 0.000000e+00 : f32
    %39 = vector.broadcast %cst_37 : f32 to vector<8x16xf32>
    %40 = arith.maximumf %38, %39 : vector<8x16xf32>
    %c0_38 = arith.constant 0 : index
    %c0_39 = arith.constant 0 : index
    %c0_40 = arith.constant 0 : index
    %41 = vector.load %arg6[%c0_38, %c0_39, %c0_40] : memref<3x8x1xf32, #tpu.memory_space<vmem>>, vector<1x8x1xf32>
    %42 = vector.shape_cast %41 : vector<1x8x1xf32> to vector<8x1xf32>
    %43 = vector.broadcast %42 : vector<8x1xf32> to vector<8x16xf32>
    %44 = arith.mulf %40, %43 : vector<8x16xf32>
    %c0_41 = arith.constant 0 : index
    %c0_42 = arith.constant 0 : index
    %c0_43 = arith.constant 0 : index
    %45 = vector.load %arg7[%c0_41, %c0_42, %c0_43] : memref<3x8x1xf32, #tpu.memory_space<vmem>>, vector<1x8x1xf32>
    %46 = vector.shape_cast %45 : vector<1x8x1xf32> to vector<8x1xf32>
    %47 = vector.broadcast %46 : vector<8x1xf32> to vector<8x16xf32>
    %48 = arith.addf %44, %47 : vector<8x16xf32>
    %49 = arith.truncf %48 : vector<8x16xf32> to vector<8x16xbf16>
    %c0_44 = arith.constant 0 : index
    %c0_45 = arith.constant 0 : index
    %50 = vector.load %arg18[%c0_44, %c0_45] : memref<32x16xbf16, #tpu.memory_space<vmem>>, vector<8x16xbf16>
    tpu.vector_store %arg18[%c0_44, %c0_45], %49 {strides = array<i32>} : memref<32x16xbf16, #tpu.memory_space<vmem>>, vector<8x16xbf16>,
    %c8 = arith.constant 8 : index
    %c0_46 = arith.constant 0 : index
    %51 = vector.load %arg17[%c8, %c0_46] : memref<24x16xf32, #tpu.memory_space<vmem>>, vector<8x16xf32>
    %52 = arith.addf %48, %51 : vector<8x16xf32>
    %53 = arith.truncf %52 : vector<8x16xf32> to vector<8x16xbf16>
    %c0_47 = arith.constant 0 : index
    %c128_48 = arith.constant 128 : index
    %54 = vector.load %arg16[%c0_47, %c128_48] : memref<8x272xbf16, #tpu.memory_space<vmem>>, vector<8x16xbf16>
    tpu.vector_store %arg16[%c0_47, %c128_48], %53 {strides = array<i32>} : memref<8x272xbf16, #tpu.memory_space<vmem>>, vector<8x16xbf16>,
    %c1_49 = arith.constant 1 : index
    %c0_50 = arith.constant 0 : index
    %c0_51 = arith.constant 0 : index
    %c0_52 = arith.constant 0 : index
    %55 = vector.load %arg5[%c1_49, %c0_50, %c0_51, %c0_52] : memref<3x3x8x8xbf16, #tpu.memory_space<vmem>>, vector<1x1x8x8xbf16>
    %56 = vector.shape_cast %55 : vector<1x1x8x8xbf16> to vector<8x8xbf16>
    %c0_53 = arith.constant 0 : index
    %c127_54 = arith.constant 127 : index
    %57 = vector.load %arg16[%c0_53, %c127_54] : memref<8x272xbf16, #tpu.memory_space<vmem>>, vector<8x16xbf16>
    %cst_55 = arith.constant dense<0.000000e+00> : vector<8x16xf32>
    %58 = tpu.matmul %56, %57, %cst_55 {dimension_numbers = #tpu.dot_dimension_numbers<[1], [0], [0], [1], [0, 0, 1, 1], [], []>} : vector<8x8xbf16>, vector<8x16xbf16>, vector<8x16xf32> -> vector<8x16xf32>
    %c1_56 = arith.constant 1 : index
    %c1_57 = arith.constant 1 : index
    %c0_58 = arith.constant 0 : index
    %c0_59 = arith.constant 0 : index
    %59 = vector.load %arg5[%c1_56, %c1_57, %c0_58, %c0_59] : memref<3x3x8x8xbf16, #tpu.memory_space<vmem>>, vector<1x1x8x8xbf16>
    %60 = vector.shape_cast %59 : vector<1x1x8x8xbf16> to vector<8x8xbf16>
    %c0_60 = arith.constant 0 : index
    %c128_61 = arith.constant 128 : index
    %61 = vector.load %arg16[%c0_60, %c128_61] : memref<8x272xbf16, #tpu.memory_space<vmem>>, vector<8x16xbf16>
    %cst_62 = arith.constant dense<0.000000e+00> : vector<8x16xf32>
    %62 = tpu.matmul %60, %61, %cst_62 {dimension_numbers = #tpu.dot_dimension_numbers<[1], [0], [0], [1], [0, 0, 1, 1], [], []>} : vector<8x8xbf16>, vector<8x16xbf16>, vector<8x16xf32> -> vector<8x16xf32>
    %63 = arith.addf %58, %62 : vector<8x16xf32>
    %c1_63 = arith.constant 1 : index
    %c2_64 = arith.constant 2 : index
    %c0_65 = arith.constant 0 : index
    %c0_66 = arith.constant 0 : index
    %64 = vector.load %arg5[%c1_63, %c2_64, %c0_65, %c0_66] : memref<3x3x8x8xbf16, #tpu.memory_space<vmem>>, vector<1x1x8x8xbf16>
    %65 = vector.shape_cast %64 : vector<1x1x8x8xbf16> to vector<8x8xbf16>
    %c0_67 = arith.constant 0 : index
    %c129_68 = arith.constant 129 : index
    %66 = vector.load %arg16[%c0_67, %c129_68] : memref<8x272xbf16, #tpu.memory_space<vmem>>, vector<8x16xbf16>
    %cst_69 = arith.constant dense<0.000000e+00> : vector<8x16xf32>
    %67 = tpu.matmul %65, %66, %cst_69 {dimension_numbers = #tpu.dot_dimension_numbers<[1], [0], [0], [1], [0, 0, 1, 1], [], []>} : vector<8x8xbf16>, vector<8x16xbf16>, vector<8x16xf32> -> vector<8x16xf32>
    %68 = arith.addf %63, %67 : vector<8x16xf32>
    %cst_70 = arith.constant 0.000000e+00 : f32
    %69 = vector.broadcast %cst_70 : f32 to vector<8x16xf32>
    %70 = arith.maximumf %68, %69 : vector<8x16xf32>
    %c1_71 = arith.constant 1 : index
    %c0_72 = arith.constant 0 : index
    %c0_73 = arith.constant 0 : index
    %71 = vector.load %arg6[%c1_71, %c0_72, %c0_73] : memref<3x8x1xf32, #tpu.memory_space<vmem>>, vector<1x8x1xf32>
    %72 = vector.shape_cast %71 : vector<1x8x1xf32> to vector<8x1xf32>
    %73 = vector.broadcast %72 : vector<8x1xf32> to vector<8x16xf32>
    %74 = arith.mulf %70, %73 : vector<8x16xf32>
    %c1_74 = arith.constant 1 : index
    %c0_75 = arith.constant 0 : index
    %c0_76 = arith.constant 0 : index
    %75 = vector.load %arg7[%c1_74, %c0_75, %c0_76] : memref<3x8x1xf32, #tpu.memory_space<vmem>>, vector<1x8x1xf32>
    %76 = vector.shape_cast %75 : vector<1x8x1xf32> to vector<8x1xf32>
    %77 = vector.broadcast %76 : vector<8x1xf32> to vector<8x16xf32>
    %78 = arith.addf %74, %77 : vector<8x16xf32>
    %79 = arith.truncf %78 : vector<8x16xf32> to vector<8x16xbf16>
    %c8_77 = arith.constant 8 : index
    %c0_78 = arith.constant 0 : index
    %80 = vector.load %arg18[%c8_77, %c0_78] : memref<32x16xbf16, #tpu.memory_space<vmem>>, vector<8x16xbf16>
    tpu.vector_store %arg18[%c8_77, %c0_78], %79 {strides = array<i32>} : memref<32x16xbf16, #tpu.memory_space<vmem>>, vector<8x16xbf16>,
    %c16 = arith.constant 16 : index
    %c0_79 = arith.constant 0 : index
    %81 = vector.load %arg17[%c16, %c0_79] : memref<24x16xf32, #tpu.memory_space<vmem>>, vector<8x16xf32>
    %82 = arith.addf %78, %81 : vector<8x16xf32>
    %83 = arith.truncf %82 : vector<8x16xf32> to vector<8x16xbf16>
    %c0_80 = arith.constant 0 : index
    %c128_81 = arith.constant 128 : index
    %84 = vector.load %arg16[%c0_80, %c128_81] : memref<8x272xbf16, #tpu.memory_space<vmem>>, vector<8x16xbf16>
    tpu.vector_store %arg16[%c0_80, %c128_81], %83 {strides = array<i32>} : memref<8x272xbf16, #tpu.memory_space<vmem>>, vector<8x16xbf16>,
    %c2_82 = arith.constant 2 : index
    %c0_83 = arith.constant 0 : index
    %c0_84 = arith.constant 0 : index
    %c0_85 = arith.constant 0 : index
    %85 = vector.load %arg5[%c2_82, %c0_83, %c0_84, %c0_85] : memref<3x3x8x8xbf16, #tpu.memory_space<vmem>>, vector<1x1x8x8xbf16>
    %86 = vector.shape_cast %85 : vector<1x1x8x8xbf16> to vector<8x8xbf16>
    %c0_86 = arith.constant 0 : index
    %c127_87 = arith.constant 127 : index
    %87 = vector.load %arg16[%c0_86, %c127_87] : memref<8x272xbf16, #tpu.memory_space<vmem>>, vector<8x16xbf16>
    %cst_88 = arith.constant dense<0.000000e+00> : vector<8x16xf32>
    %88 = tpu.matmul %86, %87, %cst_88 {dimension_numbers = #tpu.dot_dimension_numbers<[1], [0], [0], [1], [0, 0, 1, 1], [], []>} : vector<8x8xbf16>, vector<8x16xbf16>, vector<8x16xf32> -> vector<8x16xf32>
    %c2_89 = arith.constant 2 : index
    %c1_90 = arith.constant 1 : index
    %c0_91 = arith.constant 0 : index
    %c0_92 = arith.constant 0 : index
    %89 = vector.load %arg5[%c2_89, %c1_90, %c0_91, %c0_92] : memref<3x3x8x8xbf16, #tpu.memory_space<vmem>>, vector<1x1x8x8xbf16>
    %90 = vector.shape_cast %89 : vector<1x1x8x8xbf16> to vector<8x8xbf16>
    %c0_93 = arith.constant 0 : index
    %c128_94 = arith.constant 128 : index
    %91 = vector.load %arg16[%c0_93, %c128_94] : memref<8x272xbf16, #tpu.memory_space<vmem>>, vector<8x16xbf16>
    %cst_95 = arith.constant dense<0.000000e+00> : vector<8x16xf32>
    %92 = tpu.matmul %90, %91, %cst_95 {dimension_numbers = #tpu.dot_dimension_numbers<[1], [0], [0], [1], [0, 0, 1, 1], [], []>} : vector<8x8xbf16>, vector<8x16xbf16>, vector<8x16xf32> -> vector<8x16xf32>
    %93 = arith.addf %88, %92 : vector<8x16xf32>
    %c2_96 = arith.constant 2 : index
    %c2_97 = arith.constant 2 : index
    %c0_98 = arith.constant 0 : index
    %c0_99 = arith.constant 0 : index
    %94 = vector.load %arg5[%c2_96, %c2_97, %c0_98, %c0_99] : memref<3x3x8x8xbf16, #tpu.memory_space<vmem>>, vector<1x1x8x8xbf16>
    %95 = vector.shape_cast %94 : vector<1x1x8x8xbf16> to vector<8x8xbf16>
    %c0_100 = arith.constant 0 : index
    %c129_101 = arith.constant 129 : index
    %96 = vector.load %arg16[%c0_100, %c129_101] : memref<8x272xbf16, #tpu.memory_space<vmem>>, vector<8x16xbf16>
    %cst_102 = arith.constant dense<0.000000e+00> : vector<8x16xf32>
    %97 = tpu.matmul %95, %96, %cst_102 {dimension_numbers = #tpu.dot_dimension_numbers<[1], [0], [0], [1], [0, 0, 1, 1], [], []>} : vector<8x8xbf16>, vector<8x16xbf16>, vector<8x16xf32> -> vector<8x16xf32>
    %98 = arith.addf %93, %97 : vector<8x16xf32>
    %cst_103 = arith.constant 0.000000e+00 : f32
    %99 = vector.broadcast %cst_103 : f32 to vector<8x16xf32>
    %100 = arith.maximumf %98, %99 : vector<8x16xf32>
    %c2_104 = arith.constant 2 : index
    %c0_105 = arith.constant 0 : index
    %c0_106 = arith.constant 0 : index
    %101 = vector.load %arg6[%c2_104, %c0_105, %c0_106] : memref<3x8x1xf32, #tpu.memory_space<vmem>>, vector<1x8x1xf32>
    %102 = vector.shape_cast %101 : vector<1x8x1xf32> to vector<8x1xf32>
    %103 = vector.broadcast %102 : vector<8x1xf32> to vector<8x16xf32>
    %104 = arith.mulf %100, %103 : vector<8x16xf32>
    %c2_107 = arith.constant 2 : index
    %c0_108 = arith.constant 0 : index
    %c0_109 = arith.constant 0 : index
    %105 = vector.load %arg7[%c2_107, %c0_108, %c0_109] : memref<3x8x1xf32, #tpu.memory_space<vmem>>, vector<1x8x1xf32>
    %106 = vector.shape_cast %105 : vector<1x8x1xf32> to vector<8x1xf32>
    %107 = vector.broadcast %106 : vector<8x1xf32> to vector<8x16xf32>
    %108 = arith.addf %104, %107 : vector<8x16xf32>
    %109 = arith.truncf %108 : vector<8x16xf32> to vector<8x16xbf16>
    %c16_110 = arith.constant 16 : index
    %c0_111 = arith.constant 0 : index
    %110 = vector.load %arg18[%c16_110, %c0_111] : memref<32x16xbf16, #tpu.memory_space<vmem>>, vector<8x16xbf16>
    tpu.vector_store %arg18[%c16_110, %c0_111], %109 {strides = array<i32>} : memref<32x16xbf16, #tpu.memory_space<vmem>>, vector<8x16xbf16>,
    %c0_112 = arith.constant 0 : index
    %c0_113 = arith.constant 0 : index
    %111 = vector.load %arg8[%c0_112, %c0_113] : memref<32x32xbf16, #tpu.memory_space<vmem>>, vector<32x32xbf16>
    %c0_114 = arith.constant 0 : index
    %c0_115 = arith.constant 0 : index
    %112 = vector.load %arg18[%c0_114, %c0_115] : memref<32x16xbf16, #tpu.memory_space<vmem>>, vector<32x16xbf16>
    %cst_116 = arith.constant dense<0.000000e+00> : vector<32x16xf32>
    %113 = tpu.matmul %111, %112, %cst_116 {dimension_numbers = #tpu.dot_dimension_numbers<[1], [0], [0], [1], [0, 0, 1, 1], [], []>} : vector<32x32xbf16>, vector<32x16xbf16>, vector<32x16xf32> -> vector<32x16xf32>
    %cst_117 = arith.constant 0.000000e+00 : f32
    %114 = vector.broadcast %cst_117 : f32 to vector<32x16xf32>
    %115 = arith.maximumf %113, %114 : vector<32x16xf32>
    %c0_118 = arith.constant 0 : index
    %c0_119 = arith.constant 0 : index
    %116 = vector.load %arg9[%c0_118, %c0_119] : memref<32x1xf32, #tpu.memory_space<vmem>>, vector<32x1xf32>
    %117 = vector.broadcast %116 : vector<32x1xf32> to vector<32x16xf32>
    %118 = arith.mulf %115, %117 : vector<32x16xf32>
    %c0_120 = arith.constant 0 : index
    %c0_121 = arith.constant 0 : index
    %119 = vector.load %arg10[%c0_120, %c0_121] : memref<32x1xf32, #tpu.memory_space<vmem>>, vector<32x1xf32>
    %120 = vector.broadcast %119 : vector<32x1xf32> to vector<32x16xf32>
    %121 = arith.addf %118, %120 : vector<32x16xf32>
    %cst_122 = arith.constant dense<0.000000e+00> : vector<32xf32>
    %122 = vector.multi_reduction <add>, %121, %cst_122 [1] : vector<32x16xf32> to vector<32xf32>
    %123 = vector.shape_cast %122 : vector<32xf32> to vector<32x1xf32>
    %cst_123 = arith.constant 6.250000e-02 : f32
    %124 = vector.broadcast %cst_123 : f32 to vector<32x1xf32>
    %125 = arith.mulf %123, %124 : vector<32x1xf32>
    %c0_124 = arith.constant 0 : index
    %c0_125 = arith.constant 0 : index
    %126 = vector.load %arg11[%c0_124, %c0_125] : memref<16x32xbf16, #tpu.memory_space<vmem>>, vector<16x32xbf16>
    %127 = arith.truncf %125 : vector<32x1xf32> to vector<32x1xbf16>
    %cst_126 = arith.constant dense<0.000000e+00> : vector<16x1xf32>
    %128 = tpu.matmul %126, %127, %cst_126 {dimension_numbers = #tpu.dot_dimension_numbers<[1], [0], [0], [1], [0, 0, 1, 1], [], []>} : vector<16x32xbf16>, vector<32x1xbf16>, vector<16x1xf32> -> vector<16x1xf32>
    %c0_127 = arith.constant 0 : index
    %c0_128 = arith.constant 0 : index
    %129 = vector.load %arg12[%c0_127, %c0_128] : memref<16x1xf32, #tpu.memory_space<vmem>>, vector<16x1xf32>
    %130 = arith.addf %128, %129 : vector<16x1xf32>
    %cst_129 = arith.constant 0.000000e+00 : f32
    %131 = vector.broadcast %cst_129 : f32 to vector<16x1xf32>
    %132 = arith.maximumf %130, %131 : vector<16x1xf32>
    %c0_130 = arith.constant 0 : index
    %c0_131 = arith.constant 0 : index
    %133 = vector.load %arg13[%c0_130, %c0_131] : memref<32x16xbf16, #tpu.memory_space<vmem>>, vector<32x16xbf16>
    %134 = arith.truncf %132 : vector<16x1xf32> to vector<16x1xbf16>
    %cst_132 = arith.constant dense<0.000000e+00> : vector<32x1xf32>
    %135 = tpu.matmul %133, %134, %cst_132 {dimension_numbers = #tpu.dot_dimension_numbers<[1], [0], [0], [1], [0, 0, 1, 1], [], []>} : vector<32x16xbf16>, vector<16x1xbf16>, vector<32x1xf32> -> vector<32x1xf32>
    %c0_133 = arith.constant 0 : index
    %c0_134 = arith.constant 0 : index
    %136 = vector.load %arg14[%c0_133, %c0_134] : memref<32x1xf32, #tpu.memory_space<vmem>>, vector<32x1xf32>
    %137 = arith.addf %135, %136 : vector<32x1xf32>
    %138 = arith.negf %137 : vector<32x1xf32>
    %139 = math.exp %138 : vector<32x1xf32>
    %cst_135 = arith.constant 1.000000e+00 : f32
    %140 = vector.broadcast %cst_135 : f32 to vector<32x1xf32>
    %141 = arith.addf %140, %139 : vector<32x1xf32>
    %142 = arith.divf %140, %141 : vector<32x1xf32>
    %c0_136 = arith.constant 0 : index
    %c0_137 = arith.constant 0 : index
    %c0_138 = arith.constant 0 : index
    %143 = vector.load %arg1[%c0_136, %c0_137, %c0_138] : memref<1x32x16xf32, #tpu.memory_space<vmem>>, vector<1x32x16xf32>
    %144 = vector.shape_cast %143 : vector<1x32x16xf32> to vector<32x16xf32>
    %145 = vector.broadcast %142 : vector<32x1xf32> to vector<32x16xf32>
    %146 = arith.mulf %121, %145 : vector<32x16xf32>
    %147 = arith.addf %144, %146 : vector<32x16xf32>
    %148 = arith.truncf %147 : vector<32x16xf32> to vector<32x16xbf16>
    %c0_139 = arith.constant 0 : index
    %c0_140 = arith.constant 0 : index
    %c0_141 = arith.constant 0 : index
    %149 = vector.load %arg15[%c0_139, %c0_140, %c0_141] : memref<1x32x16xbf16, #tpu.memory_space<vmem>>, vector<1x32x16xbf16>
    %150 = vector.shape_cast %149 : vector<1x32x16xbf16> to vector<32x16xbf16>
    %151 = vector.shape_cast %148 : vector<32x16xbf16> to vector<1x32x16xbf16>
    tpu.vector_store %arg15[%c0_139, %c0_140, %c0_141], %151 {strides = array<i32>} : memref<1x32x16xbf16, #tpu.memory_space<vmem>>, vector<1x32x16xbf16>,
    return
  }
  func.func @transform_0(%arg0: i32) -> (i32, i32, i32) {
    %c0_i32 = arith.constant 0 : i32
    %c0_i32_0 = arith.constant 0 : i32
    %c0_i32_1 = arith.constant 0 : i32
    return %arg0, %c0_i32, %c0_i32_0 : i32, i32, i32
  }
  func.func @transform_1(%arg0: i32) -> (i32, i32) {
    %c0_i32 = arith.constant 0 : i32
    %c0_i32_0 = arith.constant 0 : i32
    %c0_i32_1 = arith.constant 0 : i32
    return %c0_i32, %c0_i32_0 : i32, i32
  }
  func.func @transform_2(%arg0: i32) -> (i32, i32) {
    %c0_i32 = arith.constant 0 : i32
    %c0_i32_0 = arith.constant 0 : i32
    %c0_i32_1 = arith.constant 0 : i32
    return %c0_i32, %c0_i32_0 : i32, i32
  }
  func.func @transform_3(%arg0: i32) -> (i32, i32) {
    %c0_i32 = arith.constant 0 : i32
    %c0_i32_0 = arith.constant 0 : i32
    %c0_i32_1 = arith.constant 0 : i32
    return %c0_i32, %c0_i32_0 : i32, i32
  }
  func.func @transform_4(%arg0: i32) -> (i32, i32, i32, i32) {
    %c0_i32 = arith.constant 0 : i32
    %c0_i32_0 = arith.constant 0 : i32
    %c0_i32_1 = arith.constant 0 : i32
    %c0_i32_2 = arith.constant 0 : i32
    %c0_i32_3 = arith.constant 0 : i32
    return %c0_i32, %c0_i32_0, %c0_i32_1, %c0_i32_2 : i32, i32, i32, i32
  }
  func.func @transform_5(%arg0: i32) -> (i32, i32, i32) {
    %c0_i32 = arith.constant 0 : i32
    %c0_i32_0 = arith.constant 0 : i32
    %c0_i32_1 = arith.constant 0 : i32
    %c0_i32_2 = arith.constant 0 : i32
    return %c0_i32, %c0_i32_0, %c0_i32_1 : i32, i32, i32
  }
  func.func @transform_6(%arg0: i32) -> (i32, i32, i32) {
    %c0_i32 = arith.constant 0 : i32
    %c0_i32_0 = arith.constant 0 : i32
    %c0_i32_1 = arith.constant 0 : i32
    %c0_i32_2 = arith.constant 0 : i32
    return %c0_i32, %c0_i32_0, %c0_i32_1 : i32, i32, i32
  }
  func.func @transform_7(%arg0: i32) -> (i32, i32) {
    %c0_i32 = arith.constant 0 : i32
    %c0_i32_0 = arith.constant 0 : i32
    %c0_i32_1 = arith.constant 0 : i32
    return %c0_i32, %c0_i32_0 : i32, i32
  }
  func.func @transform_8(%arg0: i32) -> (i32, i32) {
    %c0_i32 = arith.constant 0 : i32
    %c0_i32_0 = arith.constant 0 : i32
    %c0_i32_1 = arith.constant 0 : i32
    return %c0_i32, %c0_i32_0 : i32, i32
  }
  func.func @transform_9(%arg0: i32) -> (i32, i32) {
    %c0_i32 = arith.constant 0 : i32
    %c0_i32_0 = arith.constant 0 : i32
    %c0_i32_1 = arith.constant 0 : i32
    return %c0_i32, %c0_i32_0 : i32, i32
  }
  func.func @transform_10(%arg0: i32) -> (i32, i32) {
    %c0_i32 = arith.constant 0 : i32
    %c0_i32_0 = arith.constant 0 : i32
    %c0_i32_1 = arith.constant 0 : i32
    return %c0_i32, %c0_i32_0 : i32, i32
  }
  func.func @transform_11(%arg0: i32) -> (i32, i32) {
    %c0_i32 = arith.constant 0 : i32
    %c0_i32_0 = arith.constant 0 : i32
    %c0_i32_1 = arith.constant 0 : i32
    return %c0_i32, %c0_i32_0 : i32, i32
  }
  func.func @transform_12(%arg0: i32) -> (i32, i32) {
    %c0_i32 = arith.constant 0 : i32
    %c0_i32_0 = arith.constant 0 : i32
    %c0_i32_1 = arith.constant 0 : i32
    return %c0_i32, %c0_i32_0 : i32, i32
  }
  func.func @transform_13(%arg0: i32) -> (i32, i32) {
    %c0_i32 = arith.constant 0 : i32
    %c0_i32_0 = arith.constant 0 : i32
    %c0_i32_1 = arith.constant 0 : i32
    return %c0_i32, %c0_i32_0 : i32, i32
  }
  func.func @transform_14(%arg0: i32) -> (i32, i32, i32) {
    %c0_i32 = arith.constant 0 : i32
    %c0_i32_0 = arith.constant 0 : i32
    %c0_i32_1 = arith.constant 0 : i32
    return %arg0, %c0_i32, %c0_i32_0 : i32, i32, i32
  }
}

</mosaic_0001>

<bundles_post_ra>
// kernel: tpu_custom_call.1
= control target key start
LH: loop header
LB: loop body
LE: loop exit
PB: predicated region body
PF: predicated region fallthrough
CT: control target
= control target key end

     0   :  { %s1918_s29 = smov 0   ;;  %s2195_s0 = inlined_call_operand.vmem [shape: f32[2,32,16], index: 0, kind: input, shape index: {}]   ;;  %s2196_s1 = inlined_call_operand.vmem [shape: bf16[32,32], index: 1, kind: input, shape index: {}]   ;;  %s2197_s2 = inlined_call_operand.vmem [shape: f32[32,1], index: 2, kind: input, shape index: {}]   ;;  %s2198_s3 = inlined_call_operand.vmem [shape: f32[32,1], index: 3, kind: input, shape index: {}]   ;;  %s2199_s4 = inlined_call_operand.vmem [shape: bf16[3,3,8,8], index: 4, kind: input, shape index: {}]   ;;  %s2200_s5 = inlined_call_operand.vmem [shape: f32[3,8,1], index: 5, kind: input, shape index: {}]   ;;  %s2201_s6 = inlined_call_operand.vmem [shape: f32[3,8,1], index: 6, kind: input, shape index: {}]   ;;  %s2202_s7 = inlined_call_operand.vmem [shape: bf16[32,32], index: 7, kind: input, shape index: {}]   ;;  %s2203_s8 = inlined_call_operand.vmem [shape: f32[32,1], index: 8, kind: input, shape index: {}]   ;;  %s2204_s9 = inlined_call_operand.vmem [shape: f32[32,1], index: 9, kind: input, shape index: {}]   ;;  %s2205_s10 = inlined_call_operand.vmem [shape: bf16[16,32], index: 10, kind: input, shape index: {}]   ;;  %s2206_s11 = inlined_call_operand.vmem [shape: f32[16,1], index: 11, kind: input, shape index: {}]   ;;  %s2207_s12 = inlined_call_operand.vmem [shape: bf16[32,16], index: 12, kind: input, shape index: {}]   ;;  %s2208_s13 = inlined_call_operand.vmem [shape: f32[32,1], index: 13, kind: input, shape index: {}]   ;;  %s2209_s14 = inlined_call_operand.vmem [shape: bf16[2,32,16], index: 14, kind: output, shape index: {}]  }
   0x1 LB: > { %s1594_s30 = sadd.s32 4294967295, %s1836_s29   ;;  %p1598_p0 = scmp.ge.s32.totalorder %s1836_s29, 1  ;;  %s1836_s29 = sphi %s1918_s29, %s24_s29  }
   0x2   : > { %p412_p1 = scmp.lt.s32.totalorder %s1836_s29, 3 }
   0x4   : > { %p413_p2 = pnand %p1598_p0, %p412_p1 }
   0x5   : > { %p458_p3 = scmp.lt.s32.totalorder (!%p413_p2), %s1594_s30, 1  ;;  %s1841_s15 = smov (!%p413_p2), 127  }
   0x6   : > { %416 = sbr.rel (%p413_p2) target bundleno = 2198 (0x896), region = 76  ;;  %s1842_s16 = smov (!%p413_p2), 1  }
   0xb   : > { %v1796_v0 = vld [vmem:[%s2196_s1] sm:$0xff]   ;;  %vm494_vm0 = vcmask 261120   ;;  %s2211_s30 = smov (!%p458_p3, %s1594_s30), 1  ;;  %vm470_vm1 = vcmask 1043584   ;;  %vm471_vm2 = vcmask 130052   ;;  %v1838_v2 = vmov 0  }
   0xc   : > { %1701 = vmatprep.mubr.msk.bf16.mxu0 %vm494_vm0, %v1796_v0  ;;  %v554_v1 = vld [vmem:[%s2197_s2] sm:$0xff]  ;;  %vm472_vm3 = vmor %vm471_vm2, %vm470_vm1  ;;  %1794 = vset.pattern.permute.xlu0 %v1838_v2  ;;  %469 = vst [vmem:[#allocation2] sm:$0xf] %v1838_v2  ;;  %s1659_s19 = sshll.u32 %s2211_s30, 5  ;;  %v1797_v10 = vld [vmem:[%s2196_s1 + $0x8] sm:$0xff]   ;;  %v1839_v11 = vmov 0.0  }
   0xd   : > { %1795 = vset.pattern.permute.xlu1 %v1838_v2  ;;  %473 = vst.msk [vmem:[#allocation2 + $0x4] sm:$0xff] %vm472_vm3, %v1838_v2  ;;  %560 = vperm.xlu0 %1794, %v554_v1   ;;  %v582_v3 = vld [vmem:[%s2198_s3] sm:$0xff]  ;;  %s462_s24 = scalar_lea.vmem %s2195_s0, %s1659_s19  ;;  %vm1840_vm4 = vmmov 0   ;;  %vm610_vm5 = vcmask 130048   ;;  %vm615_vm6 = vcmask 125952   ;;  %vm629_vm7 = vcmask 1043456  }
   0xe   : > { %v1942_v4 = vld [vmem:[%s462_s24 + $0x10] sm:$0xff]  ;;  %v1944_v5 = vld [vmem:[%s462_s24 + $0x18] sm:$0xff]  ;;  %v1946_v6 = vld [vmem:[%s462_s24] sm:$0xff]  ;;  %1705 = vmatprep.subr.bf16.mxu1 %v1839_v11  ;;  %1707 = vmatprep.mubr.msk.bf16.mxu1 %vm1840_vm4, %v1839_v11  ;;  %vm625_vm8 = vcmask 64512   ;;  %vm682_vm9 = vcmask 7168   ;;  %s1660_s28 = sshll.u32 %s2211_s30, 4 }
   0xf   : > { %v483_v7 = vpack.c.bf16 %v1944_v5, %v1942_v4  ;;  %v1950_v8 = vld [vmem:[%s462_s24 + $0x8] sm:$0xff]  ;;  %v1607_v26 = vld [vmem:[%s2199_s4 + $0x4] sm:$0xf]  ;;  %v620_v39 = vld [vmem:[%s2199_s4] sm:$0xf]  ;;  %s467_s18 = scalar_lea.vmem %s2209_s14, %s1660_s28 }
  0x10   : > { %v482_v9 = vpack.c.bf16 %v1950_v8, %v1946_v6  ;;  %v583_v27 = vld [vmem:[%s2198_s3 + $0x8] sm:$0xff]  ;;  %v792_v29 = vld [vmem:[%s2201_s6] sm:$0xff] }
  0x11   : > { %588 = vperm.xlu0 %1794, %v582_v3   ;;  %1697 = vmatprep.subr.bf16.mxu0 %v483_v7  ;;  %v555_v30 = vld [vmem:[%s2197_s2 + $0x8] sm:$0xff]  ;;  %v785_v31 = vld [vmem:[%s2200_s5] sm:$0xff] }
  0x12   : > { %1698 = vmatpush3.bf16.msra.mxu0 %v483_v7  ;;  %v1612_v35 = vld [vmem:[%s2199_s4 + $0x8] sm:$0xf] }
  0x13   : > { %1699 = vmatprep.subr.bf16.mxu0 %v482_v9 }
  0x16   : > { %1700 = vmatpush3.bf16.msra.mxu0 %v482_v9 }
  0x17   : > { %1717 = vmatprep.subr.bf16.mxu0 %v1839_v11 }
  0x19   : > { %1702 = vmatmul.mubr.msk.bf16.vlgmr.msra.gmra.mxu0 %vm494_vm0, %v1797_v10 }
  0x1a   : > { %1719 = vmatprep.mubr.msk.bf16.mxu0 %vm1840_vm4, %v1839_v11 }
  0x88   : > { %v561_v12 = vpop.permute.xlu0 %560 }
  0x8c   : > { %v589_v17 = vpop.permute.xlu0 %588 }
  0xd9   : > { %v1964_v13 = vpop.f32.mrf.mxu0 }
  0xdb   : > { %v535_v14 = vpop.f32.mrf.mxu0 }
  0xdc   : > { %v550_v15 = vmax.f32 %v535_v14, 0.0 }
  0xdd   : > { %v2005_v40 = vpop.f32.mrf.mxu0 }
  0xde   : > { %v578_v16 = vmul.f32 %v561_v12, %v550_v15 }
  0xdf   : > { %v538_v41 = vpop.f32.mrf.mxu0 }
  0xe0   : > { %v606_v18 = vadd.f32 %v589_v17, %v578_v16  ;;  %v551_v42 = vmax.f32 %v538_v41, 0.0  ;;  %v1616_v17 = vld [vmem:[%s2199_s4 + $0x10] sm:$0xf] }
  0xe2   : > { %611 = vst.msk [vmem:[#allocation3] sm:$0xff] %vm610_vm5, %v606_v18  ;;  %v556_v18 = vld [vmem:[%s2197_s2 + $0x10] sm:$0xff] }
  0xe9   : > { %v617_v19 = vld [vmem:[#allocation3] sm:$0xff] }
  0xea   : > { %v618_v20 = vpack.c.bf16 %v617_v19, %v617_v19 }
  0xec   : > { %619 = vst.msk [vmem:[#allocation2 + $0x4] sm:$0xf] %vm615_vm6, %v618_v20  ;;  %v1624_v20 = vld [vmem:[%s2200_s5 + $0x8] sm:$0xff] }
  0xf3   : > { %v624_v21 = vld [vmem:[#allocation2 + $0x4] sm:$0xf] }
  0xf4   : > { %v621_v22 = vld [vmem:[#allocation2] sm:$0xff]  ;;  %v631_v23 = vsel %vm629_vm7, %v624_v21, 0  ;;  %v1613_v24 = vcombine.low %v624_v21, %v624_v21  ;;  %v584_v21 = vld [vmem:[%s2198_s3 + $0x10] sm:$0xff] }
  0xf5   : > { %v1609_v25 = vcombine.low %v621_v22, %v621_v22  ;;  %1706 = vmatpush3.bf16.msra.mxu1 %v631_v23  ;;  %v1610_v28 = vcombine.high %v621_v22, %v621_v22  ;;  %v1625_v22 = vld [vmem:[%s2201_s6 + $0x8] sm:$0xff] }
  0xf6   : > { %735 = vrot.lane.b32.xlu0 %v1613_v24, %s1841_s15  ;;  %1711 = vmatprep.subr.bf16.mxu1 %v1839_v11 }
  0xf7   : > { %678 = vrot.lane.b32.xlu1 %v1609_v25, %s1842_s16 }
  0xf8   : > { %1708 = vmatmul.mubr.msk.bf16.vlgmr.msra.gmra.mxu1 %vm625_vm8, %v1607_v26 }
  0xf9   : > { %1713 = vmatprep.mubr.msk.bf16.mxu1 %vm1840_vm4, %v1839_v11 }
  0xfa   : > { %593 = vperm.xlu0 %1794, %v583_v27   ;;  %v1615_v27 = vld [vmem:[%s2199_s4 + $0xc] sm:$0xf] }
  0xfb   : > { %680 = vrot.lane.b32.xlu1 %v1610_v28, %s1842_s16 }
  0xfe   : > { %795 = vperm.xlu0 %1794, %v792_v29  }
  0xff   : > { %565 = vperm.xlu1 %1795, %v555_v30   ;;  %v1621_v30 = vld [vmem:[%s2199_s4 + $0x14] sm:$0xf] }
 0x103   : > { %788 = vperm.xlu1 %1795, %v785_v31  }
 0x168   : > { %v736_v32 = vpop.permute.xlu0 %735 }
 0x169   : > { %v679_v33 = vpop.permute.xlu1 %678  ;;  %v741_v34 = vsel %vm629_vm7, %v736_v32, 0  ;;  %v552_v32 = vmax.f32 %v1964_v13, 0.0 }
 0x16a   : > { %1718 = vmatpush3.bf16.msra.mxu0 %v741_v34 }
 0x16b   : > { %1729 = vmatprep.subr.bf16.mxu0 %v1839_v11 }
 0x16d   : > { %v681_v36 = vpop.permute.xlu1 %680  ;;  %1720 = vmatmul.mubr.msk.bf16.vlgmr.msra.gmra.mxu0 %vm625_vm8, %v1612_v35 }
 0x16e   : > { %v683_v37 = vsel %vm682_vm9, %v679_v33, %v681_v36  ;;  %1731 = vmatprep.mubr.msk.bf16.mxu0 %vm1840_vm4, %v1839_v11 }
 0x16f   : > { %v688_v38 = vsel %vm629_vm7, %v683_v37, 0 }
 0x170   : > { %1712 = vmatpush3.bf16.msra.mxu1 %v688_v38 }
 0x171   : > { %1723 = vmatprep.subr.bf16.mxu1 %v1839_v11 }
 0x173   : > { %1714 = vmatmul.mubr.msk.bf16.vlgmr.msra.gmra.mxu1 %vm625_vm8, %v620_v39 }
 0x174   : > { %1725 = vmatprep.mubr.msk.bf16.mxu1 %vm1840_vm4, %v1839_v11 }
 0x175   : > { %v594_v45 = vpop.permute.xlu0 %593 }
 0x179   : > { %v796_v0 = vpop.permute.xlu0 %795 }
 0x17a   : > { %v566_v43 = vpop.permute.xlu1 %565 }
 0x17b   : > { %v579_v44 = vmul.f32 %v566_v43, %v551_v42 }
 0x17d   : > { %v607_v46 = vadd.f32 %v594_v45, %v579_v44 }
 0x17e   : > { %v789_v61 = vpop.permute.xlu1 %788 }
 0x17f   : > { %612 = vst.msk [vmem:[#allocation3 + $0x8] sm:$0xff] %vm610_vm5, %v607_v46 }
 0x186   : > { %v801_v2 = vld [vmem:[#allocation3 + $0x8] sm:$0xff] }
 0x1b8   : > { %v667_v47 = vpop.f32.mrf.mxu1 }
 0x1ba   : > { %v1709_v48 = vpop.f32.mrf.mxu1 }
 0x1bc   : > { %v670_v49 = vpop.f32.mrf.mxu1 }
 0x1be   : > { %v1710_v50 = vpop.f32.mrf.mxu1 }
 0x22d   : > { %v777_v51 = vpop.f32.mrf.mxu0 }
 0x22f   : > { %v1721_v52 = vpop.f32.mrf.mxu0 }
 0x231   : > { %v780_v53 = vpop.f32.mrf.mxu0 }
 0x233   : > { %v724_v54 = vpop.f32.mrf.mxu1  ;;  %v1722_v56 = vpop.f32.mrf.mxu0 }
 0x234   : > { %v725_v55 = vadd.f32 %v724_v54, %v667_v47 }
 0x235   : > { %v1715_v57 = vpop.f32.mrf.mxu1 }
 0x236   : > { %v783_v58 = vadd.f32 %v777_v51, %v725_v55 }
 0x237   : > { %v727_v59 = vpop.f32.mrf.mxu1 }
 0x238   : > { %v784_v60 = vmax.f32 %v783_v58, 0.0 }
 0x239   : > { %v1716_v62 = vpop.f32.mrf.mxu1 }
 0x23a   : > { %v791_v63 = vmul.f32 %v789_v61, %v784_v60 }
 0x23c   : > { %v798_v1 = vadd.f32 %v796_v0, %v791_v63  ;;  %v1627_v0 = vld [vmem:[%s2199_s4 + $0x1c] sm:$0xf] }
 0x23e   : > { %v799_v3 = vpack.c.bf16 %v798_v1, %v798_v1  ;;  %v802_v7 = vadd.f32 %v801_v2, %v798_v1  ;;  %v557_v1 = vld [vmem:[%s2197_s2 + $0x18] sm:$0xff] }
 0x240   : > { %800 = vst.msk [vmem:[#allocation4] sm:$0xf] %vm615_vm6, %v799_v3  ;;  %v803_v9 = vpack.c.bf16 %v802_v7, %v802_v7  ;;  %v585_v3 = vld [vmem:[%s2198_s3 + $0x18] sm:$0xff]  ;;  %v1635_v7 = vld [vmem:[%s2200_s5 + $0x10] sm:$0xff] }
 0x242   : > { %804 = vst.msk [vmem:[#allocation2 + $0x4] sm:$0xf] %vm615_vm6, %v803_v9  ;;  %v1262_v9 = vld [vmem:[%s2203_s8 + $0x10] sm:$0xff] }
 0x249   : > { %v810_v10 = vld [vmem:[#allocation2 + $0x4] sm:$0xf] }
 0x24a   : > { %v807_v12 = vld [vmem:[#allocation2] sm:$0xff]  ;;  %v815_v14 = vsel %vm629_vm7, %v810_v10, 0  ;;  %v1622_v19 = vcombine.low %v810_v10, %v810_v10  ;;  %v1636_v10 = vld [vmem:[%s2201_s6 + $0x10] sm:$0xff] }
 0x24b   : > { %v1619_v15 = vcombine.high %v807_v12, %v807_v12  ;;  %v1618_v16 = vcombine.low %v807_v12, %v807_v12  ;;  %1724 = vmatpush3.bf16.msra.mxu1 %v815_v14  ;;  %v1290_v12 = vld [vmem:[%s2204_s9 + $0x10] sm:$0xff]  ;;  %v1263_v14 = vld [vmem:[%s2203_s8 + $0x18] sm:$0xff] }
 0x24c   : > { %1735 = vmatprep.subr.bf16.mxu1 %v1839_v11 }
 0x24d   : > { %864 = vrot.lane.b32.xlu0 %v1619_v15, %s1842_s16  ;;  %862 = vrot.lane.b32.xlu1 %v1618_v16, %s1842_s16  ;;  %v1260_v15 = vld [vmem:[%s2203_s8] sm:$0xff]  ;;  %v1291_v16 = vld [vmem:[%s2204_s9 + $0x18] sm:$0xff] }
 0x24e   : > { %1726 = vmatmul.mubr.msk.bf16.vlgmr.msra.gmra.mxu1 %vm625_vm8, %v1616_v17  ;;  %v1288_v17 = vld [vmem:[%s2204_s9] sm:$0xff] }
 0x24f   : > { %1737 = vmatprep.mubr.msk.bf16.mxu1 %vm1840_vm4, %v1839_v11 }
 0x251   : > { %570 = vperm.xlu0 %1794, %v556_v18   ;;  %918 = vrot.lane.b32.xlu1 %v1622_v19, %s1841_s15  ;;  %v1261_v18 = vld [vmem:[%s2203_s8 + $0x8] sm:$0xff] }
 0x252   : > { %v1289_v19 = vld [vmem:[%s2204_s9 + $0x8] sm:$0xff] }
 0x255   : > { %972 = vperm.xlu0 %1794, %v1624_v20   ;;  %598 = vperm.xlu1 %1795, %v584_v21  }
 0x259   : > { %980 = vperm.xlu1 %1795, %v1625_v22  }
 0x2bf   : > { %v865_v23 = vpop.permute.xlu0 %864  ;;  %v863_v24 = vpop.permute.xlu1 %862 }
 0x2c0   : > { %v866_v25 = vsel %vm682_vm9, %v863_v24, %v865_v23  ;;  %v1626_v24 = vld [vmem:[%s2199_s4 + $0x18] sm:$0xf] }
 0x2c1   : > { %v871_v26 = vsel %vm629_vm7, %v866_v25, 0 }
 0x2c2   : > { %1730 = vmatpush3.bf16.msra.mxu0 %v871_v26 }
 0x2c3   : > { %v919_v28 = vpop.permute.xlu1 %918  ;;  %1741 = vmatprep.subr.bf16.mxu0 %v1839_v11 }
 0x2c4   : > { %v924_v29 = vsel %vm629_vm7, %v919_v28, 0 }
 0x2c5   : > { %1732 = vmatmul.mubr.msk.bf16.vlgmr.msra.gmra.mxu0 %vm625_vm8, %v1615_v27  ;;  %1736 = vmatpush3.bf16.msra.mxu1 %v924_v29  ;;  %v1632_v27 = vld [vmem:[%s2199_s4 + $0x20] sm:$0xf]  ;;  %v553_v29 = vmax.f32 %v2005_v40, 0.0 }
 0x2c6   : > { %1743 = vmatprep.mubr.msk.bf16.mxu0 %vm1840_vm4, %v1839_v11  ;;  %1747 = vmatprep.subr.bf16.mxu1 %v1839_v11 }
 0x2c8   : > { %1738 = vmatmul.mubr.msk.bf16.vlgmr.msra.gmra.mxu1 %vm625_vm8, %v1621_v30 }
 0x2c9   : > { %1749 = vmatprep.mubr.msk.bf16.mxu1 %vm1840_vm4, %v1839_v11 }
 0x2cc   : > { %v571_v31 = vpop.permute.xlu0 %570 }
 0x2cd   : > { %v580_v33 = vmul.f32 %v571_v31, %v552_v32 }
 0x2d0   : > { %v599_v34 = vpop.permute.xlu1 %598  ;;  %v973_v50 = vpop.permute.xlu0 %972 }
 0x2d1   : > { %v608_v35 = vadd.f32 %v599_v34, %v580_v33 }
 0x2d3   : > { %613 = vst.msk [vmem:[#allocation3 + $0x10] sm:$0xff] %vm610_vm5, %v608_v35 }
 0x2d4   : > { %v981_v52 = vpop.permute.xlu1 %980 }
 0x2da   : > { %v986_v55 = vld [vmem:[#allocation3 + $0x10] sm:$0xff] }
 0x30e   : > { %v851_v36 = vpop.f32.mrf.mxu1 }
 0x310   : > { %v1727_v37 = vpop.f32.mrf.mxu1 }
 0x312   : > { %v854_v38 = vpop.f32.mrf.mxu1 }
 0x313   : > { %v1809_v38 = vld [vmem:[%s2202_s7] sm:$0xff]  }
 0x314   : > { %v1728_v39 = vpop.f32.mrf.mxu1 }
 0x385   : > { %v907_v41 = vpop.f32.mrf.mxu0 }
 0x386   : > { %v908_v42 = vadd.f32 %v907_v41, %v851_v36 }
 0x387   : > { %v1733_v43 = vpop.f32.mrf.mxu0 }
 0x388   : > { %v960_v44 = vpop.f32.mrf.mxu1 }
 0x389   : > { %v966_v45 = vadd.f32 %v960_v44, %v908_v42  ;;  %v910_v46 = vpop.f32.mrf.mxu0 }
 0x38a   : > { %v1739_v47 = vpop.f32.mrf.mxu1 }
 0x38b   : > { %v967_v48 = vmax.f32 %v966_v45, 0.0  ;;  %v1734_v49 = vpop.f32.mrf.mxu0 }
 0x38c   : > { %v963_v13 = vpop.f32.mrf.mxu1 }
 0x38d   : > { %v975_v51 = vmul.f32 %v973_v50, %v967_v48 }
 0x38e   : > { %v1740_v53 = vpop.f32.mrf.mxu1 }
 0x38f   : > { %v983_v54 = vadd.f32 %v981_v52, %v975_v51 }
 0x391   : > { %v984_v56 = vpack.c.bf16 %v983_v54, %v983_v54  ;;  %v987_v57 = vadd.f32 %v986_v55, %v983_v54 }
 0x393   : > { %985 = vst.msk [vmem:[#allocation4 + $0x4] sm:$0xf] %vm615_vm6, %v984_v56  ;;  %v988_v58 = vpack.c.bf16 %v987_v57, %v987_v57  ;;  %v1810_v56 = vld [vmem:[%s2202_s7 + $0x8] sm:$0xff]  }
 0x395   : > { %989 = vst.msk [vmem:[#allocation2 + $0x4] sm:$0xf] %vm615_vm6, %v988_v58 }
 0x39a   : > { %v1808_v55 = vld [vmem:[#allocation4] sm:$0xff]  }
 0x39c   : > { %v995_v59 = vld [vmem:[#allocation2 + $0x4] sm:$0xf] }
 0x39d   : > { %v992_v60 = vld [vmem:[#allocation2] sm:$0xff]  ;;  %v1000_v61 = vsel %vm629_vm7, %v995_v59, 0  ;;  %v1633_v2 = vcombine.low %v995_v59, %v995_v59 }
 0x39e   : > { %v1630_v62 = vcombine.high %v992_v60, %v992_v60  ;;  %v1629_v63 = vcombine.low %v992_v60, %v992_v60  ;;  %1742 = vmatpush3.bf16.msra.mxu0 %v1000_v61 }
 0x39f   : > { %1753 = vmatprep.subr.bf16.mxu0 %v1839_v11 }
 0x3a0   : > { %1049 = vrot.lane.b32.xlu1 %v1630_v62, %s1842_s16  ;;  %1047 = vrot.lane.b32.xlu0 %v1629_v63, %s1842_s16 }
 0x3a1   : > { %1744 = vmatmul.mubr.msk.bf16.vlgmr.msra.gmra.mxu0 %vm625_vm8, %v1627_v0 }
 0x3a2   : > { %1755 = vmatprep.mubr.msk.bf16.mxu0 %vm1840_vm4, %v1839_v11 }
 0x3a4   : > { %575 = vperm.xlu1 %1795, %v557_v1   ;;  %1103 = vrot.lane.b32.xlu0 %v1633_v2, %s1841_s15 }
 0x3a8   : > { %603 = vperm.xlu1 %1795, %v585_v3   ;;  %1157 = vperm.xlu0 %1794, %v1635_v7  }
 0x3ac   : > { %1276 = vperm.xlu1 %1795, %v1262_v9   ;;  %1165 = vperm.xlu0 %1794, %v1636_v10  }
 0x3b0   : > { %1304 = vperm.xlu1 %1795, %v1290_v12   ;;  %1281 = vperm.xlu0 %1794, %v1263_v14  }
 0x3b4   : > { %1266 = vperm.xlu1 %1795, %v1260_v15   ;;  %1309 = vperm.xlu0 %1794, %v1291_v16  }
 0x3b8   : > { %1294 = vperm.xlu1 %1795, %v1288_v17   ;;  %1271 = vperm.xlu0 %1794, %v1261_v18  }
 0x3bc   : > { %1299 = vperm.xlu0 %1794, %v1289_v19  }
 0x412   : > { %v1050_v20 = vpop.permute.xlu1 %1049  ;;  %v1048_v21 = vpop.permute.xlu0 %1047 }
 0x413   : > { %v1051_v22 = vsel %vm682_vm9, %v1048_v21, %v1050_v20 }
 0x414   : > { %v1056_v23 = vsel %vm629_vm7, %v1051_v22, 0 }
 0x415   : > { %1748 = vmatpush3.bf16.msra.mxu1 %v1056_v23 }
 0x416   : > { %v1104_v25 = vpop.permute.xlu0 %1103 }
 0x417   : > { %v1109_v26 = vsel %vm629_vm7, %v1104_v25, 0 }
 0x418   : > { %1750 = vmatmul.mubr.msk.bf16.vlgmr.msra.gmra.mxu1 %vm625_vm8, %v1626_v24  ;;  %1754 = vmatpush3.bf16.msra.mxu0 %v1109_v26 }
 0x419   : > { %1767 = vmatprep.subr.bf16.mxu0 %v1839_v11  ;;  %1763 = vmatprep.mubr.msk.bf16.mxu1 %vm494_vm0, %v1809_v38  ;;  %v1812_v38 = vld [vmem:[%s2207_s12] sm:$0xff]  }
 0x41b   : > { %1756 = vmatmul.mubr.msk.bf16.vlgmr.msra.gmra.mxu0 %vm625_vm8, %v1632_v27 }
 0x41c   : > { %1771 = vmatprep.mubr.msk.bf16.mxu0 %vm1840_vm4, %v1839_v11 }
 0x41f   : > { %v576_v28 = vpop.permute.xlu1 %575 }
 0x420   : > { %v581_v30 = vmul.f32 %v576_v28, %v553_v29 }
 0x423   : > { %v604_v31 = vpop.permute.xlu1 %603  ;;  %v1158_v40 = vpop.permute.xlu0 %1157 }
 0x424   : > { %v609_v32 = vadd.f32 %v604_v31, %v581_v30 }
 0x426   : > { %v614_v33 = vpack.c.bf16 %v609_v32, %v609_v32 }
 0x427   : > { %v1166_v13 = vpop.permute.xlu0 %1165  ;;  %v1277_v57 = vpop.permute.xlu1 %1276 }
 0x428   : > { %616 = vst.msk [vmem:[#allocation4 + $0xc] sm:$0xf] %vm615_vm6, %v614_v33 }
 0x42b   : > { %v1282_v58 = vpop.permute.xlu0 %1281  ;;  %v1305_v59 = vpop.permute.xlu1 %1304 }
 0x42f   : > { %v1310_v60 = vpop.permute.xlu0 %1309  ;;  %v1267_v0 = vpop.permute.xlu1 %1266 }
 0x433   : > { %v1272_v3 = vpop.permute.xlu0 %1271  ;;  %v1295_v20 = vpop.permute.xlu1 %1294 }
 0x437   : > { %v1300_v21 = vpop.permute.xlu0 %1299 }
 0x461   : > { %v1036_v34 = vpop.f32.mrf.mxu0 }
 0x463   : > { %v1745_v35 = vpop.f32.mrf.mxu0 }
 0x465   : > { %v1039_v36 = vpop.f32.mrf.mxu0 }
 0x467   : > { %v1746_v37 = vpop.f32.mrf.mxu0 }
 0x468   : > { %v1811_v37 = vld [vmem:[%s2205_s10] sm:$0xff]  }
 0x4d8   : > { %v1092_v39 = vpop.f32.mrf.mxu1 }
 0x4d9   : > { %v1093_v41 = vadd.f32 %v1092_v39, %v1036_v34  ;;  %v1336_v39 = vld [vmem:[%s2206_s11] sm:$0xff] }
 0x4da   : > { %v1751_v42 = vpop.f32.mrf.mxu1 }
 0x4db   : > { %v1145_v43 = vpop.f32.mrf.mxu0  ;;  %v1337_v42 = vld [vmem:[%s2206_s11 + $0x8] sm:$0xff] }
 0x4dc   : > { %v1151_v44 = vadd.f32 %v1145_v43, %v1093_v41  ;;  %v1095_v45 = vpop.f32.mrf.mxu1 }
 0x4dd   : > { %v1757_v46 = vpop.f32.mrf.mxu0 }
 0x4de   : > { %v1152_v47 = vmax.f32 %v1151_v44, 0.0  ;;  %v1752_v48 = vpop.f32.mrf.mxu1 }
 0x4df   : > { %v1148_v49 = vpop.f32.mrf.mxu0 }
 0x4e0   : > { %v1160_v50 = vmul.f32 %v1158_v40, %v1152_v47  ;;  %v1813_v49 = vld [vmem:[%s2207_s12 + $0x8] sm:$0xff]  }
 0x4e1   : > { %v1758_v51 = vpop.f32.mrf.mxu0 }
 0x4e2   : > { %v1168_v52 = vadd.f32 %v1166_v13, %v1160_v50  ;;  %v1396_v50 = vld [vmem:[%s2208_s13 + $0x10] sm:$0xff]  ;;  %v1394_v51 = vld [vmem:[%s2208_s13] sm:$0xff] }
 0x4e4   : > { %v1169_v53 = vpack.c.bf16 %v1168_v52, %v1168_v52 }
 0x4e6   : > { %1170 = vst.msk [vmem:[#allocation4 + $0x8] sm:$0xf] %vm615_vm6, %v1169_v53 }
 0x4ed   : > { %v1807_v54 = vld [vmem:[#allocation4 + $0x8] sm:$0xff]  }
 0x4ee   : > { %1759 = vmatprep.subr.bf16.mxu1 %v1807_v54 }
 0x4ef   : > { %1760 = vmatpush3.bf16.msra.mxu1 %v1807_v54  ;;  %v1397_v54 = vld [vmem:[%s2208_s13 + $0x18] sm:$0xff] }
 0x4f0   : > { %1761 = vmatprep.subr.bf16.mxu1 %v1808_v55 }
 0x4f3   : > { %1762 = vmatpush3.bf16.msra.mxu1 %v1808_v55 }
 0x4f6   : > { %1764 = vmatmul.mubr.msk.bf16.vlgmr.msra.gmra.mxu1 %vm494_vm0, %v1810_v56 }
 0x4f7   : > { %1777 = vmatprep.mubr.msk.bf16.mxu1 %vm610_vm5, %v1812_v38 }
 0x5b6   : > { %v1765_v61 = vpop.f32.mrf.mxu1 }
 0x5b7   : > { %v1258_v62 = vmax.f32 %v1765_v61, 0.0 }
 0x5b8   : > { %v1241_v63 = vpop.f32.mrf.mxu1 }
 0x5b9   : > { %v1286_v1 = vmul.f32 %v1277_v57, %v1258_v62  ;;  %v1256_v2 = vmax.f32 %v1241_v63, 0.0  ;;  %v1395_v57 = vld [vmem:[%s2208_s13 + $0x8] sm:$0xff] }
 0x5ba   : > { %v1766_v7 = vpop.f32.mrf.mxu1 }
 0x5bb   : > { %v1259_v9 = vmax.f32 %v1766_v7, 0.0  ;;  %v2129_v10 = vadd.f32 %v1305_v59, %v1286_v1  ;;  %v1284_v14 = vmul.f32 %v1267_v0, %v1256_v2 }
 0x5bc   : > { %v1244_v12 = vpop.f32.mrf.mxu1 }
 0x5bd   : > { %v1287_v15 = vmul.f32 %v1282_v58, %v1259_v9  ;;  %v1257_v16 = vmax.f32 %v1244_v12, 0.0  ;;  %v1322_v17 = vsel %vm610_vm5, %v2129_v10, 0.0  ;;  %v2139_v24 = vadd.f32 %v1295_v20, %v1284_v14 }
 0x5be   : > { %1323 = vadd.xlane.f32.xlu1 %v1322_v17 }
 0x5bf   : > { %v1285_v18 = vmul.f32 %v1272_v3, %v1257_v16  ;;  %v2133_v19 = vadd.f32 %v1310_v60, %v1287_v15  ;;  %v1316_v26 = vsel %vm610_vm5, %v2139_v24, 0.0 }
 0x5c1   : > { %v1325_v22 = vsel %vm610_vm5, %v2133_v19, 0.0  ;;  %v2137_v23 = vadd.f32 %v1300_v21, %v1285_v18 }
 0x5c2   : > { %1326 = vadd.xlane.f32.xlu0 %v1325_v22 }
 0x5c3   : > { %v1319_v25 = vsel %vm610_vm5, %v2137_v23, 0.0 }
 0x5c4   : > { %1320 = vadd.xlane.f32.xlu1 %v1319_v25 }
 0x5c6   : > { %1317 = vadd.xlane.f32.xlu0 %v1316_v26 }
 0x647   : > { %v1324_v27 = vpop.xlane.xlu1 %1323 }
 0x648   : > { %v1330_v29 = vmul.f32 0.0625, %v1324_v27 }
 0x64b   : > { %v1327_v28 = vpop.xlane.xlu0 %1326 }
 0x64c   : > { %v1331_v30 = vmul.f32 0.0625, %v1327_v28 }
 0x64d   : > { %v1321_v31 = vpop.xlane.xlu1 %1320 }
 0x64e   : > { %v1335_v32 = vpack.c.bf16 %v1331_v30, %v1330_v29  ;;  %v1329_v34 = vmul.f32 0.0625, %v1321_v31 }
 0x64f   : > { %v1318_v33 = vpop.xlane.xlu0 %1317 }
 0x650   : > { %v1328_v35 = vmul.f32 0.0625, %v1318_v33  ;;  %1768 = vmatpush3.bf16.msra.mxu0 %v1335_v32 }
 0x651   : > { %1769 = vmatprep.subr.bf16.mxu0 %v1839_v11 }
 0x652   : > { %v1334_v36 = vpack.c.bf16 %v1329_v34, %v1328_v35 }
 0x654   : > { %1770 = vmatpush3.bf16.msra.mxu0 %v1334_v36 }
 0x657   : > { %1772 = vmatmul.mubr.msk.bf16.vlgmr.msra.gmra.mxu0 %vm494_vm0, %v1811_v37 }
 0x717   : > { %v1380_v41 = vpop.f32.mrf.mxu0 }
 0x718   : > { %v1381_v40 = vadd.f32 %v1380_v41, %v1336_v39 }
 0x719   : > { %v1773_v11 = vpop.f32.mrf.mxu0 }
 0x71a   : > { %v1387_v46 = vmax.f32 %v1381_v40, 0.0 }
 0x71b   : > { %v1383_v43 = vpop.f32.mrf.mxu0 }
 0x71c   : > { %v1384_v44 = vadd.f32 %v1383_v43, %v1337_v42 }
 0x71d   : > { %v1774_v45 = vpop.f32.mrf.mxu0 }
 0x71e   : > { %v1388_v47 = vmax.f32 %v1384_v44, 0.0 }
 0x720   : > { %v1393_v48 = vpack.c.bf16 %v1388_v47, %v1387_v46 }
 0x722   : > { %1775 = vmatprep.subr.bf16.mxu1 %v1393_v48 }
 0x723   : > { %1776 = vmatpush3.bf16.msra.mxu1 %v1393_v48 }
 0x726   : > { %1778 = vmatmul.mubr.msk.bf16.vlgmr.msra.gmra.mxu1 %vm610_vm5, %v1813_v49 }
 0x7e6   : > { %v1779_v13 = vpop.f32.mrf.mxu1 }
 0x7e7   : > { %v1457_v52 = vadd.f32 %v1779_v13, %v1396_v50 }
 0x7e8   : > { %v1448_v53 = vpop.f32.mrf.mxu1 }
 0x7e9   : > { %v1449_v55 = vadd.f32 %v1448_v53, %v1394_v51  ;;  %v1651_v60 = vmul.f32 -1.442695, %v1457_v52 }
 0x7ea   : > { %v1780_v56 = vpop.f32.mrf.mxu1 }
 0x7eb   : > { %v1649_v58 = vmul.f32 -1.442695, %v1449_v55  ;;  %v1460_v59 = vadd.f32 %v1780_v56, %v1397_v54 }
 0x7ec   : > { %v1451_v61 = vpop.f32.mrf.mxu1 }
 0x7ed   : > { %1814 = vpow2.f32 %v1649_v58  ;;  %v1652_v62 = vmul.f32 -1.442695, %v1460_v59  ;;  %v1452_v63 = vadd.f32 %v1451_v61, %v1395_v57 }
 0x7ef   : > { %1816 = vpow2.f32 %v1652_v62  ;;  %v1650_v0 = vmul.f32 -1.442695, %v1452_v63 }
 0x7f0   : > { %1818 = vpow2.f32 %v1651_v60 }
 0x7f1   : > { %1820 = vpow2.f32 %v1650_v0 }
 0x7fa   : > { %v1815_v1 = vpop.eup %1814 }
 0x7fb   : > { %v1475_v2 = vadd.f32 1.0, %v1815_v1 }
 0x7fc   : > { %v1817_v3 = vpop.eup %1816 }
 0x7fd   : > { %v1819_v7 = vpop.eup %1818  ;;  %1822 = vrcp.f32 %v1475_v2  ;;  %v1478_v9 = vadd.f32 1.0, %v1817_v3 }
 0x7fe   : > { %v1821_v12 = vpop.eup %1820  ;;  %v1477_v15 = vadd.f32 1.0, %v1819_v7 }
 0x7ff   : > { %v1476_v14 = vadd.f32 1.0, %v1821_v12  ;;  %1824 = vrcp.f32 %v1478_v9 }
 0x801   : > { %1826 = vrcp.f32 %v1476_v14 }
 0x802   : > { %1828 = vrcp.f32 %v1477_v15 }
 0x80a   : > { %v1823_v16 = vpop.eup %1822 }
 0x80b   : > { %1493 = vperm.xlu0 %1794, %v1823_v16  }
 0x80c   : > { %v1825_v17 = vpop.eup %1824 }
 0x80e   : > { %v1827_v18 = vpop.eup %1826 }
 0x80f   : > { %1498 = vperm.xlu1 %1795, %v1827_v18   ;;  %1508 = vperm.xlu0 %1794, %v1825_v17   ;;  %v1829_v20 = vpop.eup %1828 }
 0x813   : > { %1503 = vperm.xlu1 %1795, %v1829_v20  }
 0x886   : > { %v1494_v21 = vpop.permute.xlu0 %1493 }
 0x887   : > { %v1511_v22 = vmul.f32 %v1494_v21, %v2139_v24 }
 0x889   : > { %v1515_v25 = vadd.f32 %v1511_v22, %v1946_v6 }
 0x88a   : > { %v1499_v26 = vpop.permute.xlu1 %1498  ;;  %v1509_v27 = vpop.permute.xlu0 %1508 }
 0x88b   : > { %v1661_v28 = vpack.c.bf16 %v1515_v25, %v1515_v25  ;;  %v1512_v29 = vmul.f32 %v1499_v26, %v2137_v23  ;;  %v1514_v30 = vmul.f32 %v1509_v27, %v2133_v19 }
 0x88d   : > { %1535 = vst.msk [vmem:[%s467_s18] sm:$0xf] %vm615_vm6, %v1661_v28  ;;  %v1516_v31 = vadd.f32 %v1512_v29, %v1950_v8  ;;  %v1518_v32 = vadd.f32 %v1514_v30, %v1944_v5 }
 0x88e   : > { %v1504_v24 = vpop.permute.xlu1 %1503 }
 0x88f   : > { %v1662_v33 = vpack.c.bf16 %v1516_v31, %v1516_v31  ;;  %v1664_v6 = vpack.c.bf16 %v1518_v32, %v1518_v32  ;;  %v1513_v34 = vmul.f32 %v1504_v24, %v2129_v10 }
 0x891   : > { %1536 = vst.msk [vmem:[%s467_s18 + $0x4] sm:$0xf] %vm615_vm6, %v1662_v33  ;;  %1538 = vst.msk [vmem:[%s467_s18 + $0xc] sm:$0xf] %vm615_vm6, %v1664_v6  ;;  %v1517_v35 = vadd.f32 %v1513_v34, %v1942_v4 }
 0x893   : > { %v1663_v23 = vpack.c.bf16 %v1517_v35, %v1517_v35 }
 0x895   : > { %1537 = vst.msk [vmem:[%s467_s18 + $0x8] sm:$0xf] %vm615_vm6, %v1663_v23 }
 0x896 PF: > { %s24_s29 = sadd.s32 1, %s1836_s29  }
 0x897   : > { %p21_p4 = scmp.ge.s32.totalorder %s24_s29, 4  }
 0x899   :  { %23 = sbr.rel (!%p21_p4) target bundleno = 1 (0x1), region = 118 }

</bundles_post_ra>
